<compile_context>
chip_gen: v7x
topology: tpu7x:2x2x1
jax: 0.10.0
libtpu: 0.0.40
codegen_flags: <defaults>
</compile_context>

<pallas_src>
import functools
import math

import jax
import jax.numpy as jnp
from jax.experimental import pallas as pl
from jax.experimental.pallas import tpu as pltpu


# ---------------------------------------------------------------------------
# Hardware / tiling helpers
# ---------------------------------------------------------------------------

_VMEM_CAP = None


def _vmem_capacity_bytes():
    """Physical VMEM per TensorCore (128 MiB v5e/v6e, 64 MiB v7x); cached."""
    global _VMEM_CAP
    if _VMEM_CAP is None:
        cap = None
        try:
            cap = int(getattr(pltpu.get_tpu_info(), "vmem_capacity_bytes", 0))
        except Exception:
            cap = None
        _VMEM_CAP = cap if cap else (64 << 20)  # conservative (v7x-sized) fallback
    return _VMEM_CAP


def _cdiv(a, b):
    return -(-a // b)


def _round_up(x, m):
    return _cdiv(x, m) * m


def _choose_rows_per_block(rows, row_bytes, block_budget):
    """Largest multiple-of-8 row count whose block fits `block_budget`, nudged so the
    row-block count is even (v7x shards the "parallel" grid axis over 2 TensorCores)."""
    max_rows = max(8, (block_budget // max(1, row_bytes)) // 8 * 8)
    rpb = min(max_rows, _round_up(rows, 8))
    nb = _cdiv(rows, rpb)
    if nb == 1 and rows > 8:
        rpb = _round_up(_cdiv(rows, 2), 8)           # split a single block into two
    elif nb > 1 and nb % 2 == 1:
        # Best effort: shrink up to 2x looking for an even block count.
        for cand in range(rpb, max(8, rpb // 2) - 1, -8):
            if _cdiv(rows, cand) % 2 == 0:
                rpb = cand
                break
    return rpb


def _choose_time_tile(t, itemsize, vmem_limit):
    """Largest multiple-of-128 divisor of T whose 8-row block fits the tiled budget."""
    # Tiled path keeps 4 input + 2 output blocks live, double-buffered -> 12 x block.
    max_tt = (vmem_limit // (12 * 8 * itemsize)) // 128 * 128
    if t % 128 != 0 or max_tt < 128:
        return None
    for tt in range(min(max_tt, t), 0, -128):
        if t % tt == 0:
            return tt
    return None


# ---------------------------------------------------------------------------
# Kernels
# ---------------------------------------------------------------------------

def _roll_full_kernel(shift_ref, noisy_ref, clean_ref, noisy_out_ref, clean_out_ref):
    # shift_ref: SMEM scalar-prefetch ref (1,), int32, already reduced to [0, T).
    # Tiles are (rows_per_block, T); the roll wraps along the full lane (time) axis.
    # NOTE: if profiling shows the dynamic roll lowering off the XLU when T % 128 != 0,
    # decompose into a 128-lane-aligned shift (via indexing) plus an intra-vreg rotate
    # of s % 128 so the cross-lane work stays on the XLU slot.
    s = shift_ref[0]
    noisy_out_ref[...] = pltpu.roll(noisy_ref[...], s, axis=1)
    clean_out_ref[...] = pltpu.roll(clean_ref[...], s, axis=1)


def _roll_full_t(shift_arr, noisy2d, clean2d, *, rows_per_block, vmem_limit,
                 donate=False):
    rows, t = noisy2d.shape
    nb = _cdiv(rows, rows_per_block)
    spec = pl.BlockSpec((rows_per_block, t), lambda i, s_ref: (i, 0))
    kwargs = {}
    if donate:
        # Operand indices count the scalar-prefetch arg: shift=0, noisy=1, clean=2.
        # Safe: each grid step writes exactly the block it read (fully resident in
        # VMEM before writeback).  Callers must also donate into the surrounding jit
        # for the aliasing to avoid a defensive copy.
        kwargs["input_output_aliases"] = {1: 0, 2: 1}
    return pl.pallas_call(
        _roll_full_kernel,
        grid_spec=pltpu.PrefetchScalarGridSpec(
            num_scalar_prefetch=1,
            grid=(nb,),
            in_specs=[spec, spec],
            out_specs=(spec, spec),
        ),
        out_shape=(
            jax.ShapeDtypeStruct(noisy2d.shape, noisy2d.dtype),
            jax.ShapeDtypeStruct(clean2d.shape, clean2d.dtype),
        ),
        compiler_params=pltpu.CompilerParams(
            dimension_semantics=("parallel",),
            vmem_limit_bytes=int(vmem_limit),
        ),
        **kwargs,
    )(shift_arr, noisy2d, clean2d)


def _roll_tiled_kernel(shift_ref, n_a_ref, n_b_ref, c_a_ref, c_b_ref,
                       n_out_ref, c_out_ref):
    # Output time-block j needs input time-blocks (j - q - 1) % nT ("A") and
    # (j - q) % nT ("B") where shift = q*tt + r.  With both rolled right by r,
    # lanes >= r come from B and lanes < r come from A.
    tt = n_out_ref.shape[-1]
    r = shift_ref[0] % tt
    lane = jax.lax.broadcasted_iota(jnp.int32, n_out_ref.shape, 1)
    from_b = lane >= r
    n_out_ref[...] = jnp.where(from_b, pltpu.roll(n_b_ref[...], r, axis=1),
                               pltpu.roll(n_a_ref[...], r, axis=1))
    c_out_ref[...] = jnp.where(from_b, pltpu.roll(c_b_ref[...], r, axis=1),
                               pltpu.roll(c_a_ref[...], r, axis=1))


def _roll_tiled_t(shift_arr, noisy2d, clean2d, *, rows_per_block, time_tile,
                  vmem_limit):
    rows, t = noisy2d.shape
    tt = int(time_tile)
    assert t % tt == 0, "time_tile must divide T exactly (wrap never goes via padding)"
    nb_rows = _cdiv(rows, rows_per_block)
    nb_time = t // tt

    def a_map(i, j, s_ref):
        q = s_ref[0] // tt
        return (i, (j - q - 1) % nb_time)

    def b_map(i, j, s_ref):
        q = s_ref[0] // tt
        return (i, (j - q) % nb_time)

    spec_a = pl.BlockSpec((rows_per_block, tt), a_map)
    spec_b = pl.BlockSpec((rows_per_block, tt), b_map)
    spec_o = pl.BlockSpec((rows_per_block, tt), lambda i, j, s_ref: (i, j))

    return pl.pallas_call(
        _roll_tiled_kernel,
        grid_spec=pltpu.PrefetchScalarGridSpec(
            num_scalar_prefetch=1,
            grid=(nb_rows, nb_time),
            in_specs=[spec_a, spec_b, spec_a, spec_b],
            out_specs=(spec_o, spec_o),
        ),
        out_shape=(
            jax.ShapeDtypeStruct(noisy2d.shape, noisy2d.dtype),
            jax.ShapeDtypeStruct(clean2d.shape, clean2d.dtype),
        ),
        compiler_params=pltpu.CompilerParams(
            dimension_semantics=("parallel", "parallel"),
            vmem_limit_bytes=int(vmem_limit),
        ),
    )(shift_arr, noisy2d, noisy2d, clean2d, clean2d)


# ---------------------------------------------------------------------------
# Public wrapper (single jitted function = the whole forward pass)
# ---------------------------------------------------------------------------

@functools.partial(jax.jit, static_argnames=("shift_max", "donate"))
def random_shift(key, noisy_track, clean_track, shift_max, donate=False):
    """JAX/Pallas equivalent of Random_shift.forward.

    Draws shift ~ Uniform{0, ..., shift_max} on device and rolls both tracks by it
    along the last axis.  Returns ((noisy_rolled, clean_rolled), shift).
    """
    assert noisy_track.shape == clean_track.shape
    assert noisy_track.dtype == clean_track.dtype
    *lead, t = noisy_track.shape
    rows = math.prod(lead) if lead else 1

    shift = jax.random.randint(key, (), 0, shift_max + 1, dtype=jnp.int32)
    shift_arr = jnp.reshape(shift % t, (1,)).astype(jnp.int32)  # roll wraps mod T

    noisy2d = noisy_track.reshape(rows, t)
    clean2d = clean_track.reshape(rows, t)

    itemsize = jnp.dtype(noisy_track.dtype).itemsize
    vmem_limit = (_vmem_capacity_bytes() * 3) // 4   # 96 MiB v5e/v6e, 48 MiB v7x
    block_budget = min(vmem_limit // 8, 8 << 20)     # live VMEM ~= 8 x block
    row_bytes = t * itemsize

    if 8 * row_bytes <= block_budget:
        rpb = _choose_rows_per_block(rows, row_bytes, block_budget)
        n_out, c_out = _roll_full_t(shift_arr, noisy2d, clean2d,
                                    rows_per_block=rpb, vmem_limit=vmem_limit,
                                    donate=donate)
    else:
        # Full-T blocks would blow the VMEM budget (e.g. fp32 T >~ 256k on v7x):
        # tile the time axis and handle the wrap explicitly.
        tt = _choose_time_tile(t, itemsize, vmem_limit)
        if tt is None:
            # TODO(synk): T has no multiple-of-128 divisor small enough to tile; run
            # the full-T kernel at minimum rows with the VMEM limit opened up.
            n_out, c_out = _roll_full_t(shift_arr, noisy2d, clean2d,
                                        rows_per_block=8,
                                        vmem_limit=_vmem_capacity_bytes(),
                                        donate=donate)
        else:
            rpb = _choose_rows_per_block(rows, tt * itemsize, vmem_limit // 12)
            n_out, c_out = _roll_tiled_t(shift_arr, noisy2d, clean2d,
                                         rows_per_block=rpb, time_tile=tt,
                                         vmem_limit=vmem_limit)

    return (n_out.reshape(noisy_track.shape),
            c_out.reshape(clean_track.shape)), shift


class RandomShift:
    """Drop-in port of the PyTorch Random_shift module (randomness via a JAX key)."""

    def __init__(self, shift_max):
        self.shift_max = shift_max

    def __call__(self, key, noisy_track, clean_track):
        (noisy_out, clean_out), _ = random_shift(key, noisy_track, clean_track,
                                                 shift_max=self.shift_max)
        return noisy_out, clean_out


if __name__ == "__main__":
    key = jax.random.PRNGKey(0)
    k_d1, k_d2, k_s1, k_s2, k_s3 = jax.random.split(key, 5)

    # Small shapes consistent with the module: (batch, channels, time) audio tracks.
    B, C, T = 2, 4, 256
    shift_max = 16
    noisy = jax.random.normal(k_d1, (B, C, T), dtype=jnp.float32)
    clean = jax.random.normal(k_d2, (B, C, T), dtype=jnp.float32)

    # 1) Main path (full-T roll), functional wrapper.
    (n_out, c_out), shift = random_shift(k_s1, noisy, clean, shift_max=shift_max)
    jax.block_until_ready((n_out, c_out))
    assert jnp.allclose(n_out, jnp.roll(noisy, shift, axis=-1)), "noisy roll mismatch"
    assert jnp.allclose(c_out, jnp.roll(clean, shift, axis=-1)), "clean roll mismatch"

    # 2) Module-style call with a different key; a different shift must NOT retrace.
    module = RandomShift(shift_max)
    n_out2, c_out2 = module(k_s2, noisy, clean)
    jax.block_until_ready((n_out2, c_out2))
    shift2 = jax.random.randint(k_s2, (), 0, shift_max + 1, dtype=jnp.int32)
    assert jnp.allclose(n_out2, jnp.roll(noisy, shift2, axis=-1))
    assert jnp.allclose(c_out2, jnp.roll(clean, shift2, axis=-1))

    # 3) Ragged-row case (rows = 3*5 = 15, not a multiple of 8): exercises the cdiv
    #    grid (no jnp.pad copy) and the even-block-count heuristic.
    B2, C2, T2 = 3, 5, 384
    noisy_r = jax.random.normal(k_d1, (B2, C2, T2), dtype=jnp.float32)
    clean_r = jax.random.normal(k_d2, (B2, C2, T2), dtype=jnp.float32)
    (n_r, c_r), shift_r = random_shift(k_s3, noisy_r, clean_r, shift_max=100)
    jax.block_until_ready((n_r, c_r))
    assert jnp.allclose(n_r, jnp.roll(noisy_r, shift_r, axis=-1))
    assert jnp.allclose(c_r, jnp.roll(clean_r, shift_r, axis=-1))

    # 4) Exercise the large-T fallback (time-tiled roll, wrap via two source blocks)
    #    directly on a small input so it is covered without a huge allocation.
    s_small = 37
    s_arr = jnp.asarray([s_small % T], dtype=jnp.int32)
    n_t, c_t = _roll_tiled_t(s_arr, noisy.reshape(B * C, T), clean.reshape(B * C, T),
                             rows_per_block=8, time_tile=128, vmem_limit=32 << 20)
    jax.block_until_ready((n_t, c_t))
    assert jnp.allclose(n_t.reshape(B, C, T), jnp.roll(noisy, s_small, axis=-1))
    assert jnp.allclose(c_t.reshape(B, C, T), jnp.roll(clean, s_small, axis=-1))

    print("KERNEL_OK")
</pallas_src>

<mosaic_0001>
module attributes {stable_mosaic.version = 11 : i64} {
  func.func @_roll_full_kernel(%arg0: i32, %arg1: memref<1xi32, #tpu.memory_space<smem>>, %arg2: memref<8x256xf32, #tpu.memory_space<vmem>>, %arg3: memref<8x256xf32, #tpu.memory_space<vmem>>, %arg4: memref<8x256xf32, #tpu.memory_space<vmem>>, %arg5: memref<8x256xf32, #tpu.memory_space<vmem>>) attributes {dimension_semantics = [#tpu.dimension_semantics<parallel>], iteration_bounds = array<i64: 1>, scalar_prefetch = 1 : i64, scratch_operands = 0 : i64, tpu.core_type = #tpu.core_type<tc>, window_params = [{transform_indices = @transform_0, window_bounds = array<i64: 8, 256>}, {transform_indices = @transform_1, window_bounds = array<i64: 8, 256>}, {transform_indices = @transform_2, window_bounds = array<i64: 8, 256>}, {transform_indices = @transform_3, window_bounds = array<i64: 8, 256>}]} {
    %c0 = arith.constant 0 : index
    %0 = memref.load %arg1[%c0] : memref<1xi32, #tpu.memory_space<smem>>
    %c0_0 = arith.constant 0 : index
    %c0_1 = arith.constant 0 : index
    %1 = vector.load %arg2[%c0_0, %c0_1] : memref<8x256xf32, #tpu.memory_space<vmem>>, vector<8x256xf32>
    %2 = tpu.dynamic_rotate %1 by %0 dim 1 : vector<8x256xf32>, i32 -> vector<8x256xf32>
    %c0_2 = arith.constant 0 : index
    %c0_3 = arith.constant 0 : index
    %3 = vector.load %arg4[%c0_2, %c0_3] : memref<8x256xf32, #tpu.memory_space<vmem>>, vector<8x256xf32>
    tpu.vector_store %arg4[%c0_2, %c0_3], %2 {strides = array<i32>} : memref<8x256xf32, #tpu.memory_space<vmem>>, vector<8x256xf32>,
    %c0_4 = arith.constant 0 : index
    %c0_5 = arith.constant 0 : index
    %4 = vector.load %arg3[%c0_4, %c0_5] : memref<8x256xf32, #tpu.memory_space<vmem>>, vector<8x256xf32>
    %5 = tpu.dynamic_rotate %4 by %0 dim 1 : vector<8x256xf32>, i32 -> vector<8x256xf32>
    %c0_6 = arith.constant 0 : index
    %c0_7 = arith.constant 0 : index
    %6 = vector.load %arg5[%c0_6, %c0_7] : memref<8x256xf32, #tpu.memory_space<vmem>>, vector<8x256xf32>
    tpu.vector_store %arg5[%c0_6, %c0_7], %5 {strides = array<i32>} : memref<8x256xf32, #tpu.memory_space<vmem>>, vector<8x256xf32>,
    return
  }
  func.func @transform_0(%arg0: i32, %arg1: memref<1xi32, #tpu.memory_space<smem>>) -> (i32, i32) {
    %c0_i32 = arith.constant 0 : i32
    %c0_i32_0 = arith.constant 0 : i32
    return %arg0, %c0_i32 : i32, i32
  }
  func.func @transform_1(%arg0: i32, %arg1: memref<1xi32, #tpu.memory_space<smem>>) -> (i32, i32) {
    %c0_i32 = arith.constant 0 : i32
    %c0_i32_0 = arith.constant 0 : i32
    return %arg0, %c0_i32 : i32, i32
  }
  func.func @transform_2(%arg0: i32, %arg1: memref<1xi32, #tpu.memory_space<smem>>) -> (i32, i32) {
    %c0_i32 = arith.constant 0 : i32
    %c0_i32_0 = arith.constant 0 : i32
    return %arg0, %c0_i32 : i32, i32
  }
  func.func @transform_3(%arg0: i32, %arg1: memref<1xi32, #tpu.memory_space<smem>>) -> (i32, i32) {
    %c0_i32 = arith.constant 0 : i32
    %c0_i32_0 = arith.constant 0 : i32
    return %arg0, %c0_i32 : i32, i32
  }
}

</mosaic_0001>

<bundles_post_ra>
// kernel: random_shift.1
= control target key start
LH: loop header
LB: loop body
LE: loop exit
PB: predicated region body
PF: predicated region fallthrough
CT: control target
= control target key end

     0   :  { %v26_v4 = vlaneseq  ;;  %s110_s0 = inlined_call_operand.<no memory space> [shape: s32[1], index: 0, kind: input, shape index: {}]   ;;  %s111_s2 = inlined_call_operand.vmem [shape: f32[8,256], index: 2, kind: input, shape index: {}]   ;;  %s112_s1 = inlined_call_operand.vmem [shape: f32[8,256], index: 1, kind: input, shape index: {}]   ;;  %s113_s4 = inlined_call_operand.vmem [shape: f32[8,256], index: 4, kind: output, shape index: {1}]   ;;  %s114_s3 = inlined_call_operand.vmem [shape: f32[8,256], index: 3, kind: output, shape index: {0}]  }
   0x1   :  { %s18_s17 = sand.u32 255, %s110_s0   ;;  %v38_v0 = vld [vmem:[%s111_s2] sm:$0xff]  ;;  %v39_v2 = vld [vmem:[%s111_s2 + $0x8] sm:$0xff] }
   0x2   :  { %v16_v1 = vld [vmem:[%s112_s1] sm:$0xff]  ;;  %s19_s22 = sand.u32 127, %s18_s17   ;;  %v17_v3 = vld [vmem:[%s112_s1 + $0x8] sm:$0xff]  ;;  %s20_s0 = sshrl.u32 %s18_s17, 7  ;;  %v27_v5 = vand.u32 127, %v26_v4 }
   0x3   :  { %40 = vrot.lane.b32.xlu1 %v38_v0, %s19_s22  ;;  %21 = vrot.lane.b32.xlu0 %v16_v1, %s19_s22  ;;  %s31_s27 = sand.u32 1, %s20_s0  ;;  %v25_v6 = vstv %s19_s22 }
   0x4   :  { %v32_v9 = vstv %s31_s27  ;;  %vm28_vm0 = vcmp.lt.s32.totalorder %v27_v5, %v25_v6 }
   0x5   :  { %vm33_vm1 = vcmp.ne.s32.totalorder %v32_v9, 0 }
   0x7   :  { %42 = vrot.lane.b32.xlu1 %v39_v2, %s19_s22  ;;  %23 = vrot.lane.b32.xlu0 %v17_v3, %s19_s22 }
  0x75   :  { %v41_v7 = vpop.permute.xlu1 %40  ;;  %v22_v8 = vpop.permute.xlu0 %21 }
  0x79   :  { %v43_v10 = vpop.permute.xlu1 %42  ;;  %v24_v11 = vpop.permute.xlu0 %23 }
  0x7a   :  { %v44_v12 = vsel %vm28_vm0, %v41_v7, %v43_v10  ;;  %v45_v13 = vsel %vm28_vm0, %v43_v10, %v41_v7  ;;  %v29_v14 = vsel %vm28_vm0, %v22_v8, %v24_v11  ;;  %v30_v15 = vsel %vm28_vm0, %v24_v11, %v22_v8 }
  0x7b   :  { %v46_v16 = vsel %vm33_vm1, %v44_v12, %v45_v13  ;;  %v47_v17 = vsel %vm33_vm1, %v45_v13, %v44_v12  ;;  %v34_v18 = vsel %vm33_vm1, %v29_v14, %v30_v15  ;;  %v35_v19 = vsel %vm33_vm1, %v30_v15, %v29_v14 }
  0x7c   :  { %48 = vst [vmem:[%s113_s4] sm:$0xff] %v46_v16  ;;  %49 = vst [vmem:[%s113_s4 + $0x8] sm:$0xff] %v47_v17 }
  0x7d   :  { %36 = vst [vmem:[%s114_s3] sm:$0xff] %v34_v18  ;;  %37 = vst [vmem:[%s114_s3 + $0x8] sm:$0xff] %v35_v19 }

</bundles_post_ra>
